<compile_context>
chip_gen: v7x
topology: tpu7x:2x2x1
jax: 0.10.0
libtpu: 0.0.40
codegen_flags: <defaults>
</compile_context>

<pallas_src>
import functools

import numpy as np
import jax
import jax.numpy as jnp
from jax.experimental import pallas as pl
from jax.experimental.pallas import tpu as pltpu

EPS = 1e-3                      # LayerNormalization eps (added to sigma, as in torch)
_VMEM_LIMIT = 32 * 1024 * 1024  # explicit scoped-VMEM budget (safe on v5e/v6e/v7x)


def _layer_norm(x, a, b, eps=EPS):
    """Matches torch LayerNormalization: unbiased std, eps added to sigma."""
    h = x.shape[-1]
    mu = jnp.mean(x, axis=-1, keepdims=True)
    var = jnp.sum((x - mu) ** 2, axis=-1, keepdims=True) / (h - 1)   # unbiased
    sigma = jnp.sqrt(var)
    inv = pl.reciprocal(sigma + eps, approx=False)
    return (x - mu) * inv * a + b


def _row_tile(rows, max_rows=256):
    """Largest multiple-of-8 divisor of `rows` not exceeding max_rows (else full)."""
    if rows <= max_rows:
        return rows
    for t in range(max_rows, 7, -8):
        if rows % t == 0:
            return t
    return rows


# ----------------------------------------------------------------------------- #
# Kernel 1: SeparableConvolution (PE add + mask + depthwise + pointwise + LN)
#   grid = (B,)  ["parallel"], per-invocation tile: one batch row (S, H)
# ----------------------------------------------------------------------------- #
def sepconv_kernel(x_ref, mask_ref, pe_ref, wdw_ref, bdw_ref, wpw_ref, bpw_ref,
                   a_ref, b_ref, o_ref, *, kernel_size, add_pe):
    S, H = x_ref.shape
    pad = (kernel_size - 1) // 2

    x = x_ref[...]                                  # (S, H) f32
    if add_pe:
        x = x + pe_ref[...]                         # fused positional-encoding add
    xm = x * mask_ref[...]                          # input_batch * mask  (residual)

    # Depthwise conv: build the 'same' zero padding in VMEM, unrolled tap MAC (VPU, f32).
    zpad = jnp.zeros((pad, H), jnp.float32)
    xpad = jnp.concatenate([zpad, xm, zpad], axis=0)        # (S + K - 1, H)
    wdw = wdw_ref[...]                                      # (K, H)
    depth = jnp.zeros_like(xm) + bdw_ref[...]
    for j in range(kernel_size):                            # static unrolled taps
        depth = depth + xpad[j:j + S, :] * wdw[j:j + 1, :]

    # Pointwise 1x1 conv: one lane-dense (S,H)@(H,H) MXU matmul, bf16 operands, f32 acc.
    pw = jnp.dot(depth.astype(jnp.bfloat16), wpw_ref[...],
                 preferred_element_type=jnp.float32) + bpw_ref[...]
    highway = pw + xm
    o_ref[...] = _layer_norm(highway, a_ref[...], b_ref[...])


def sep_conv(x, mask, pe, p, add_pe):
    B, S, H = x.shape
    K = p['wdw'].shape[0]
    kernel = functools.partial(sepconv_kernel, kernel_size=K, add_pe=add_pe)
    return pl.pallas_call(
        kernel,
        out_shape=jax.ShapeDtypeStruct((B, S, H), jnp.float32),
        grid=(B,),
        in_specs=[
            pl.BlockSpec((None, S, H), lambda b: (b, 0, 0)),   # x      (per-batch tile)
            pl.BlockSpec((None, S, 1), lambda b: (b, 0, 0)),   # mask
            pl.BlockSpec((S, H), lambda b: (0, 0)),            # pos-encoding (resident)
            pl.BlockSpec((K, H), lambda b: (0, 0)),            # depthwise taps
            pl.BlockSpec((1, H), lambda b: (0, 0)),            # depthwise bias
            pl.BlockSpec((H, H), lambda b: (0, 0)),            # pointwise W (bf16)
            pl.BlockSpec((1, H), lambda b: (0, 0)),            # pointwise bias
            pl.BlockSpec((1, H), lambda b: (0, 0)),            # ln a
            pl.BlockSpec((1, H), lambda b: (0, 0)),            # ln b
        ],
        out_specs=pl.BlockSpec((None, S, H), lambda b: (b, 0, 0)),
        compiler_params=pltpu.CompilerParams(
            dimension_semantics=("parallel",),
            vmem_limit_bytes=_VMEM_LIMIT),
    )(x, mask, pe, p['wdw'], p['bdw'], p['wpw'], p['bpw'], p['ln_a'], p['ln_b'])


# ----------------------------------------------------------------------------- #
# Kernel 2: SelfAttention — grid = (B,) ["parallel"], fused QKV + fused out-proj
# ----------------------------------------------------------------------------- #
def attn_kernel(x_ref, mask_ref, wqkv_ref, wl_ref, bl_ref, a_ref, b_ref, o_ref,
                *, n_heads, temper):
    S, H = x_ref.shape
    dh = H // n_heads
    inv_temper = 1.0 / temper

    x = x_ref[...]                                  # (S, H) f32
    m = mask_ref[...]                               # (S, 1)
    xb = x.astype(jnp.bfloat16)

    # Fused QKV projection: one (S,H)@(H,3H) lane-dense MXU matmul.
    qkv = jnp.dot(xb, wqkv_ref[...], preferred_element_type=jnp.float32)   # (S, 3H)

    heads = []
    for h in range(n_heads):                        # static loop over heads
        q = qkv[:, h * dh:(h + 1) * dh].astype(jnp.bfloat16)
        k = qkv[:, H + h * dh:H + (h + 1) * dh].astype(jnp.bfloat16)
        v = qkv[:, 2 * H + h * dh:2 * H + (h + 1) * dh].astype(jnp.bfloat16)

        s = jnp.einsum('qd,kd->qk', q, k,
                       preferred_element_type=jnp.float32) * inv_temper
        # torch semantics: mask (S,1) expanded over the key axis -> masks whole query rows
        s = jnp.where(m == 0.0, -1e10, s)
        s = s - jnp.max(s, axis=-1, keepdims=True)
        p = jnp.exp(s)
        p = p * pl.reciprocal(jnp.sum(p, axis=-1, keepdims=True), approx=True)
        heads.append(jnp.dot(p.astype(jnp.bfloat16), v,
                             preferred_element_type=jnp.float32))          # (S, dh)

    concat = jnp.concatenate(heads, axis=-1)        # (S, H), head-major (== torch cat(split))
    y = jnp.dot(concat.astype(jnp.bfloat16), wl_ref[...],
                preferred_element_type=jnp.float32) + bl_ref[...]
    y = y * m                                       # masked_outputs
    highway = y + x                                 # + input_batch (unmasked)
    o_ref[...] = _layer_norm(highway, a_ref[...], b_ref[...])


def self_attention(x, mask, p):
    B, S, H = x.shape
    nh = p['n_heads']
    kernel = functools.partial(attn_kernel, n_heads=nh, temper=float(np.power(H, 0.5)))
    return pl.pallas_call(
        kernel,
        out_shape=jax.ShapeDtypeStruct((B, S, H), jnp.float32),
        grid=(B,),
        in_specs=[
            pl.BlockSpec((None, S, H), lambda b: (b, 0, 0)),   # x
            pl.BlockSpec((None, S, 1), lambda b: (b, 0, 0)),   # mask
            pl.BlockSpec((H, 3 * H), lambda b: (0, 0)),        # fused Wq|Wk|Wv (bf16)
            pl.BlockSpec((H, H), lambda b: (0, 0)),            # output projection (bf16)
            pl.BlockSpec((1, H), lambda b: (0, 0)),            # output bias
            pl.BlockSpec((1, H), lambda b: (0, 0)),            # ln a
            pl.BlockSpec((1, H), lambda b: (0, 0)),            # ln b
        ],
        out_specs=pl.BlockSpec((None, S, H), lambda b: (b, 0, 0)),
        compiler_params=pltpu.CompilerParams(
            dimension_semantics=("parallel",),
            vmem_limit_bytes=_VMEM_LIMIT),
    )(x, mask, p['wqkv'], p['wl'], p['bl'], p['ln_a'], p['ln_b'])


# ----------------------------------------------------------------------------- #
# Kernel 3: FeedForward — grid over flattened (B*S) row tiles ["parallel"]
# ----------------------------------------------------------------------------- #
def ff_kernel(x_ref, w1_ref, b1_ref, w2_ref, b2_ref, a_ref, b_ref, o_ref):
    x = x_ref[...]                                  # (T, H) f32
    inner = jnp.dot(x.astype(jnp.bfloat16), w1_ref[...],
                    preferred_element_type=jnp.float32) + b1_ref[...]
    inner = jnp.maximum(inner, 0.0)
    outer = jnp.dot(inner.astype(jnp.bfloat16), w2_ref[...],
                    preferred_element_type=jnp.float32) + b2_ref[...]
    highway = outer + x
    o_ref[...] = _layer_norm(highway, a_ref[...], b_ref[...])


def feed_forward(x, p):
    B, S, H = x.shape
    R = B * S
    x2 = x.reshape(R, H)                            # collapse batch into the matmul M dim
    T = _row_tile(R)
    out = pl.pallas_call(
        ff_kernel,
        out_shape=jax.ShapeDtypeStruct((R, H), jnp.float32),
        grid=(R // T,),
        in_specs=[
            pl.BlockSpec((T, H), lambda i: (i, 0)),            # activation row tile
            pl.BlockSpec((H, 2 * H), lambda i: (0, 0)),        # W1 (bf16, resident)
            pl.BlockSpec((1, 2 * H), lambda i: (0, 0)),
            pl.BlockSpec((2 * H, H), lambda i: (0, 0)),        # W2 (bf16, resident)
            pl.BlockSpec((1, H), lambda i: (0, 0)),
            pl.BlockSpec((1, H), lambda i: (0, 0)),            # ln a
            pl.BlockSpec((1, H), lambda i: (0, 0)),            # ln b
        ],
        out_specs=pl.BlockSpec((T, H), lambda i: (i, 0)),
        compiler_params=pltpu.CompilerParams(
            dimension_semantics=("parallel",),
            vmem_limit_bytes=_VMEM_LIMIT),
    )(x2, p['w1'], p['b1'], p['w2'], p['b2'], p['ln_a'], p['ln_b'])
    return out.reshape(B, S, H)


# ----------------------------------------------------------------------------- #
# PositionEncoding table (fixed sinusoid, row 0 zeros) — plain numpy glue
# ----------------------------------------------------------------------------- #
def position_encoding_table(max_positions, hidden_dim):
    emb_len = max_positions + 1
    pw = np.array(
        [[pos / np.power(10000, 2 * (j // 2) / hidden_dim) for j in range(hidden_dim)]
         if pos != 0 else np.zeros(hidden_dim) for pos in range(emb_len)])
    pw[1:, 0::2] = np.sin(pw[1:, 0::2])
    pw[1:, 1::2] = np.cos(pw[1:, 1::2])
    return jnp.asarray(pw, dtype=jnp.float32)


# ----------------------------------------------------------------------------- #
# Parameters (deterministic synthetic init) and forward driver
# ----------------------------------------------------------------------------- #
def init_params(key, n_blocks, n_conv, H, K, nh):
    bf16 = jnp.bfloat16
    params = []
    for _ in range(n_blocks):
        block = {}
        convs = []
        for _ in range(n_conv):
            key, k1, k2, k3, k4 = jax.random.split(key, 5)
            convs.append(dict(
                wdw=jax.random.normal(k1, (K, H), jnp.float32) * 0.1,     # depthwise taps (VPU, f32)
                bdw=jax.random.normal(k2, (1, H), jnp.float32) * 0.1,
                wpw=(jax.random.normal(k3, (H, H), jnp.float32) * 0.1).astype(bf16),
                bpw=jax.random.normal(k4, (1, H), jnp.float32) * 0.1,
                ln_a=jnp.ones((1, H), jnp.float32),
                ln_b=jnp.zeros((1, H), jnp.float32),
            ))
        block['convs'] = convs

        key, k1, k2, k3 = jax.random.split(key, 4)
        scale = 1.0 / np.sqrt(H)
        block['attn'] = dict(
            n_heads=nh,
            wqkv=(jax.random.normal(k1, (H, 3 * H), jnp.float32) * scale).astype(bf16),
            wl=(jax.random.normal(k2, (H, H), jnp.float32) * 0.1).astype(bf16),
            bl=jax.random.normal(k3, (1, H), jnp.float32) * 0.1,
            ln_a=jnp.ones((1, H), jnp.float32),
            ln_b=jnp.zeros((1, H), jnp.float32),
        )

        key, k1, k2, k3, k4 = jax.random.split(key, 5)
        block['ff'] = dict(
            w1=(jax.random.normal(k1, (H, 2 * H), jnp.float32) * 0.1).astype(bf16),
            b1=jax.random.normal(k2, (1, 2 * H), jnp.float32) * 0.1,
            w2=(jax.random.normal(k3, (2 * H, H), jnp.float32) * 0.1).astype(bf16),
            b2=jax.random.normal(k4, (1, H), jnp.float32) * 0.1,
            ln_a=jnp.ones((1, H), jnp.float32),
            ln_b=jnp.zeros((1, H), jnp.float32),
        )
        params.append(block)
    return params


def encoder_blocks_forward(x, mask, params, pe_table):
    B, S, H = x.shape
    pe = pe_table[:S]                               # (S, H); broadcast over batch in-kernel
    out = x
    for block in params:
        if len(block['convs']) == 0:
            out = out + pe[None]                    # PE add fallback when no conv layers
        for ci, cp in enumerate(block['convs']):
            out = sep_conv(out, mask, pe, cp, add_pe=(ci == 0))   # PE fused into first conv
        out = self_attention(out, mask, block['attn'])
        out = feed_forward(out, block['ff'])
    return out


if __name__ == "__main__":
    B, S, H = 2, 8, 32
    n_blocks, n_conv, kernel_size, attention_heads = 2, 2, 5, 4
    max_positions = 16

    key = jax.random.PRNGKey(0)
    kx, kp = jax.random.split(key, 2)

    x = jax.random.normal(kx, (B, S, H), jnp.float32)
    # mask: 1.0 for valid tokens, 0.0 for padding; shape (B, S, 1) as in the torch usage.
    lengths = jnp.array([8, 5])
    mask = (jnp.arange(S)[None, :] < lengths[:, None]).astype(jnp.float32)[:, :, None]

    params = init_params(kp, n_blocks, n_conv, H, kernel_size, attention_heads)
    pe_table = position_encoding_table(max_positions, H)

    out = encoder_blocks_forward(x, mask, params, pe_table)
    out = jax.block_until_ready(out)
    assert out.shape == (B, S, H)
    assert bool(jnp.all(jnp.isfinite(out)))
    print("KERNEL_OK")
</pallas_src>

<mosaic_0001>
module attributes {stable_mosaic.version = 11 : i64} {
  func.func @sepconv_kernel(%arg0: i32, %arg1: memref<1x8x32xf32, #tpu.memory_space<vmem>>, %arg2: memref<1x8x1xf32, #tpu.memory_space<vmem>>, %arg3: memref<8x32xf32, #tpu.memory_space<vmem>>, %arg4: memref<5x32xf32, #tpu.memory_space<vmem>>, %arg5: memref<1x32xf32, #tpu.memory_space<vmem>>, %arg6: memref<32x32xbf16, #tpu.memory_space<vmem>>, %arg7: memref<1x32xf32, #tpu.memory_space<vmem>>, %arg8: memref<1x32xf32, #tpu.memory_space<vmem>>, %arg9: memref<1x32xf32, #tpu.memory_space<vmem>>, %arg10: memref<1x8x32xf32, #tpu.memory_space<vmem>>) attributes {dimension_semantics = [#tpu.dimension_semantics<parallel>], iteration_bounds = array<i64: 2>, scalar_prefetch = 0 : i64, scratch_operands = 0 : i64, tpu.core_type = #tpu.core_type<tc>, window_params = [{transform_indices = @transform_0, window_bounds = array<i64: 1, 8, 32>}, {transform_indices = @transform_1, window_bounds = array<i64: 1, 8, 1>}, {pipeline_mode = #tpu.pipeline_mode<synchronous>, transform_indices = @transform_2, window_bounds = array<i64: 8, 32>}, {pipeline_mode = #tpu.pipeline_mode<synchronous>, transform_indices = @transform_3, window_bounds = array<i64: 5, 32>}, {pipeline_mode = #tpu.pipeline_mode<synchronous>, transform_indices = @transform_4, window_bounds = array<i64: 1, 32>}, {pipeline_mode = #tpu.pipeline_mode<synchronous>, transform_indices = @transform_5, window_bounds = array<i64: 32, 32>}, {pipeline_mode = #tpu.pipeline_mode<synchronous>, transform_indices = @transform_6, window_bounds = array<i64: 1, 32>}, {pipeline_mode = #tpu.pipeline_mode<synchronous>, transform_indices = @transform_7, window_bounds = array<i64: 1, 32>}, {pipeline_mode = #tpu.pipeline_mode<synchronous>, transform_indices = @transform_8, window_bounds = array<i64: 1, 32>}, {transform_indices = @transform_9, window_bounds = array<i64: 1, 8, 32>}]} {
    %c0 = arith.constant 0 : index
    %c0_0 = arith.constant 0 : index
    %c0_1 = arith.constant 0 : index
    %0 = vector.load %arg1[%c0, %c0_0, %c0_1] : memref<1x8x32xf32, #tpu.memory_space<vmem>>, vector<1x8x32xf32>
    %1 = vector.shape_cast %0 : vector<1x8x32xf32> to vector<8x32xf32>
    %c0_2 = arith.constant 0 : index
    %c0_3 = arith.constant 0 : index
    %2 = vector.load %arg3[%c0_2, %c0_3] : memref<8x32xf32, #tpu.memory_space<vmem>>, vector<8x32xf32>
    %3 = arith.addf %1, %2 : vector<8x32xf32>
    %c0_4 = arith.constant 0 : index
    %c0_5 = arith.constant 0 : index
    %c0_6 = arith.constant 0 : index
    %4 = vector.load %arg2[%c0_4, %c0_5, %c0_6] : memref<1x8x1xf32, #tpu.memory_space<vmem>>, vector<1x8x1xf32>
    %5 = vector.shape_cast %4 : vector<1x8x1xf32> to vector<8x1xf32>
    %6 = vector.broadcast %5 : vector<8x1xf32> to vector<8x32xf32>
    %7 = arith.mulf %3, %6 : vector<8x32xf32>
    %cst = arith.constant 0.000000e+00 : f32
    %8 = vector.broadcast %cst : f32 to vector<2x32xf32>
    %9 = tpu.concatenate %8, %7, %8 in 0 : vector<2x32xf32>, vector<8x32xf32>, vector<2x32xf32> -> vector<12x32xf32>
    %c0_7 = arith.constant 0 : index
    %c0_8 = arith.constant 0 : index
    %10 = vector.load %arg4[%c0_7, %c0_8] : memref<5x32xf32, #tpu.memory_space<vmem>>, vector<5x32xf32>
    %cst_9 = arith.constant 0.000000e+00 : f32
    %11 = vector.broadcast %cst_9 : f32 to vector<8x32xf32>
    %c0_10 = arith.constant 0 : index
    %c0_11 = arith.constant 0 : index
    %12 = vector.load %arg5[%c0_10, %c0_11] : memref<1x32xf32, #tpu.memory_space<vmem>>, vector<1x32xf32>
    %13 = vector.broadcast %12 : vector<1x32xf32> to vector<8x32xf32>
    %14 = arith.addf %11, %13 : vector<8x32xf32>
    %15 = vector.extract_strided_slice %9 {offsets = [0, 0], sizes = [8, 32], strides = [1, 1]} : vector<12x32xf32> to vector<8x32xf32>
    %16 = vector.extract_strided_slice %10 {offsets = [0, 0], sizes = [1, 32], strides = [1, 1]} : vector<5x32xf32> to vector<1x32xf32>
    %17 = vector.broadcast %16 : vector<1x32xf32> to vector<8x32xf32>
    %18 = arith.mulf %15, %17 : vector<8x32xf32>
    %19 = arith.addf %14, %18 : vector<8x32xf32>
    %20 = vector.extract_strided_slice %9 {offsets = [1, 0], sizes = [8, 32], strides = [1, 1]} : vector<12x32xf32> to vector<8x32xf32>
    %21 = vector.extract_strided_slice %10 {offsets = [1, 0], sizes = [1, 32], strides = [1, 1]} : vector<5x32xf32> to vector<1x32xf32>
    %22 = vector.broadcast %21 : vector<1x32xf32> to vector<8x32xf32>
    %23 = arith.mulf %20, %22 : vector<8x32xf32>
    %24 = arith.addf %19, %23 : vector<8x32xf32>
    %25 = vector.extract_strided_slice %9 {offsets = [2, 0], sizes = [8, 32], strides = [1, 1]} : vector<12x32xf32> to vector<8x32xf32>
    %26 = vector.extract_strided_slice %10 {offsets = [2, 0], sizes = [1, 32], strides = [1, 1]} : vector<5x32xf32> to vector<1x32xf32>
    %27 = vector.broadcast %26 : vector<1x32xf32> to vector<8x32xf32>
    %28 = arith.mulf %25, %27 : vector<8x32xf32>
    %29 = arith.addf %24, %28 : vector<8x32xf32>
    %30 = vector.extract_strided_slice %9 {offsets = [3, 0], sizes = [8, 32], strides = [1, 1]} : vector<12x32xf32> to vector<8x32xf32>
    %31 = vector.extract_strided_slice %10 {offsets = [3, 0], sizes = [1, 32], strides = [1, 1]} : vector<5x32xf32> to vector<1x32xf32>
    %32 = vector.broadcast %31 : vector<1x32xf32> to vector<8x32xf32>
    %33 = arith.mulf %30, %32 : vector<8x32xf32>
    %34 = arith.addf %29, %33 : vector<8x32xf32>
    %35 = vector.extract_strided_slice %9 {offsets = [4, 0], sizes = [8, 32], strides = [1, 1]} : vector<12x32xf32> to vector<8x32xf32>
    %36 = vector.extract_strided_slice %10 {offsets = [4, 0], sizes = [1, 32], strides = [1, 1]} : vector<5x32xf32> to vector<1x32xf32>
    %37 = vector.broadcast %36 : vector<1x32xf32> to vector<8x32xf32>
    %38 = arith.mulf %35, %37 : vector<8x32xf32>
    %39 = arith.addf %34, %38 : vector<8x32xf32>
    %40 = arith.truncf %39 : vector<8x32xf32> to vector<8x32xbf16>
    %c0_12 = arith.constant 0 : index
    %c0_13 = arith.constant 0 : index
    %41 = vector.load %arg6[%c0_12, %c0_13] : memref<32x32xbf16, #tpu.memory_space<vmem>>, vector<32x32xbf16>
    %cst_14 = arith.constant dense<0.000000e+00> : vector<8x32xf32>
    %42 = tpu.matmul %40, %41, %cst_14 {dimension_numbers = #tpu.dot_dimension_numbers<[1], [0], [0], [1], [0, 0, 1, 1], [], []>} : vector<8x32xbf16>, vector<32x32xbf16>, vector<8x32xf32> -> vector<8x32xf32>
    %c0_15 = arith.constant 0 : index
    %c0_16 = arith.constant 0 : index
    %43 = vector.load %arg7[%c0_15, %c0_16] : memref<1x32xf32, #tpu.memory_space<vmem>>, vector<1x32xf32>
    %44 = vector.broadcast %43 : vector<1x32xf32> to vector<8x32xf32>
    %45 = arith.addf %42, %44 : vector<8x32xf32>
    %46 = arith.addf %45, %7 : vector<8x32xf32>
    %c0_17 = arith.constant 0 : index
    %c0_18 = arith.constant 0 : index
    %47 = vector.load %arg8[%c0_17, %c0_18] : memref<1x32xf32, #tpu.memory_space<vmem>>, vector<1x32xf32>
    %c0_19 = arith.constant 0 : index
    %c0_20 = arith.constant 0 : index
    %48 = vector.load %arg9[%c0_19, %c0_20] : memref<1x32xf32, #tpu.memory_space<vmem>>, vector<1x32xf32>
    %cst_21 = arith.constant dense<0.000000e+00> : vector<8xf32>
    %49 = vector.multi_reduction <add>, %46, %cst_21 [1] : vector<8x32xf32> to vector<8xf32>
    %50 = vector.shape_cast %49 : vector<8xf32> to vector<8x1xf32>
    %cst_22 = arith.constant 3.200000e+01 : f32
    %51 = vector.broadcast %cst_22 : f32 to vector<8x1xf32>
    %52 = arith.divf %50, %51 : vector<8x1xf32>
    %53 = vector.broadcast %52 : vector<8x1xf32> to vector<8x32xf32>
    %54 = arith.subf %46, %53 : vector<8x32xf32>
    %55 = arith.mulf %54, %54 : vector<8x32xf32>
    %cst_23 = arith.constant dense<0.000000e+00> : vector<8xf32>
    %56 = vector.multi_reduction <add>, %55, %cst_23 [1] : vector<8x32xf32> to vector<8xf32>
    %57 = vector.shape_cast %56 : vector<8xf32> to vector<8x1xf32>
    %cst_24 = arith.constant 3.100000e+01 : f32
    %58 = vector.broadcast %cst_24 : f32 to vector<8x1xf32>
    %59 = arith.divf %57, %58 : vector<8x1xf32>
    %60 = math.sqrt %59 : vector<8x1xf32>
    %cst_25 = arith.constant 1.000000e-03 : f32
    %61 = vector.broadcast %cst_25 : f32 to vector<8x1xf32>
    %62 = arith.addf %60, %61 : vector<8x1xf32>
    %63 = tpu.reciprocal %62 : vector<8x1xf32> -> vector<8x1xf32>
    %64 = vector.broadcast %52 : vector<8x1xf32> to vector<8x32xf32>
    %65 = arith.subf %46, %64 : vector<8x32xf32>
    %66 = vector.broadcast %63 : vector<8x1xf32> to vector<8x32xf32>
    %67 = arith.mulf %65, %66 : vector<8x32xf32>
    %68 = vector.broadcast %47 : vector<1x32xf32> to vector<8x32xf32>
    %69 = arith.mulf %67, %68 : vector<8x32xf32>
    %70 = vector.broadcast %48 : vector<1x32xf32> to vector<8x32xf32>
    %71 = arith.addf %69, %70 : vector<8x32xf32>
    %c0_26 = arith.constant 0 : index
    %c0_27 = arith.constant 0 : index
    %c0_28 = arith.constant 0 : index
    %72 = vector.load %arg10[%c0_26, %c0_27, %c0_28] : memref<1x8x32xf32, #tpu.memory_space<vmem>>, vector<1x8x32xf32>
    %73 = vector.shape_cast %72 : vector<1x8x32xf32> to vector<8x32xf32>
    %74 = vector.shape_cast %71 : vector<8x32xf32> to vector<1x8x32xf32>
    tpu.vector_store %arg10[%c0_26, %c0_27, %c0_28], %74 {strides = array<i32>} : memref<1x8x32xf32, #tpu.memory_space<vmem>>, vector<1x8x32xf32>,
    return
  }
  func.func @transform_0(%arg0: i32) -> (i32, i32, i32) {
    %c0_i32 = arith.constant 0 : i32
    %c0_i32_0 = arith.constant 0 : i32
    %c0_i32_1 = arith.constant 0 : i32
    return %arg0, %c0_i32, %c0_i32_0 : i32, i32, i32
  }
  func.func @transform_1(%arg0: i32) -> (i32, i32, i32) {
    %c0_i32 = arith.constant 0 : i32
    %c0_i32_0 = arith.constant 0 : i32
    %c0_i32_1 = arith.constant 0 : i32
    return %arg0, %c0_i32, %c0_i32_0 : i32, i32, i32
  }
  func.func @transform_2(%arg0: i32) -> (i32, i32) {
    %c0_i32 = arith.constant 0 : i32
    %c0_i32_0 = arith.constant 0 : i32
    %c0_i32_1 = arith.constant 0 : i32
    return %c0_i32, %c0_i32_0 : i32, i32
  }
  func.func @transform_3(%arg0: i32) -> (i32, i32) {
    %c0_i32 = arith.constant 0 : i32
    %c0_i32_0 = arith.constant 0 : i32
    %c0_i32_1 = arith.constant 0 : i32
    return %c0_i32, %c0_i32_0 : i32, i32
  }
  func.func @transform_4(%arg0: i32) -> (i32, i32) {
    %c0_i32 = arith.constant 0 : i32
    %c0_i32_0 = arith.constant 0 : i32
    %c0_i32_1 = arith.constant 0 : i32
    return %c0_i32, %c0_i32_0 : i32, i32
  }
  func.func @transform_5(%arg0: i32) -> (i32, i32) {
    %c0_i32 = arith.constant 0 : i32
    %c0_i32_0 = arith.constant 0 : i32
    %c0_i32_1 = arith.constant 0 : i32
    return %c0_i32, %c0_i32_0 : i32, i32
  }
  func.func @transform_6(%arg0: i32) -> (i32, i32) {
    %c0_i32 = arith.constant 0 : i32
    %c0_i32_0 = arith.constant 0 : i32
    %c0_i32_1 = arith.constant 0 : i32
    return %c0_i32, %c0_i32_0 : i32, i32
  }
  func.func @transform_7(%arg0: i32) -> (i32, i32) {
    %c0_i32 = arith.constant 0 : i32
    %c0_i32_0 = arith.constant 0 : i32
    %c0_i32_1 = arith.constant 0 : i32
    return %c0_i32, %c0_i32_0 : i32, i32
  }
  func.func @transform_8(%arg0: i32) -> (i32, i32) {
    %c0_i32 = arith.constant 0 : i32
    %c0_i32_0 = arith.constant 0 : i32
    %c0_i32_1 = arith.constant 0 : i32
    return %c0_i32, %c0_i32_0 : i32, i32
  }
  func.func @transform_9(%arg0: i32) -> (i32, i32, i32) {
    %c0_i32 = arith.constant 0 : i32
    %c0_i32_0 = arith.constant 0 : i32
    %c0_i32_1 = arith.constant 0 : i32
    return %arg0, %c0_i32, %c0_i32_0 : i32, i32, i32
  }
}

</mosaic_0001>

<bundles_post_ra>
// kernel: tpu_custom_call.1
= control target key start
LH: loop header
LB: loop body
LE: loop exit
PB: predicated region body
PF: predicated region fallthrough
CT: control target
= control target key end

     0   :  { %14 = vsyncpa [#allocation3], 0  ;;  %s1159_s0 = inlined_call_operand.vmem [shape: f32[2,8,32], index: 0, kind: input, shape index: {}]   ;;  %s1160_s1 = inlined_call_operand.vmem [shape: f32[2,8,1], index: 1, kind: input, shape index: {}]   ;;  %s1161_s2 = inlined_call_operand.hbm [shape: f32[8,32], index: 2, kind: input, shape index: {}]   ;;  %s1162_s3 = inlined_call_operand.hbm [shape: f32[5,32], index: 3, kind: input, shape index: {}]   ;;  %s1163_s4 = inlined_call_operand.vmem [shape: f32[1,32], index: 4, kind: input, shape index: {}]   ;;  %s1164_s5 = inlined_call_operand.vmem [shape: bf16[32,32], index: 5, kind: input, shape index: {}]   ;;  %s1165_s6 = inlined_call_operand.vmem [shape: f32[1,32], index: 6, kind: input, shape index: {}]   ;;  %s1166_s7 = inlined_call_operand.vmem [shape: f32[1,32], index: 7, kind: input, shape index: {}]   ;;  %s1167_s8 = inlined_call_operand.vmem [shape: f32[1,32], index: 8, kind: input, shape index: {}]   ;;  %s1168_s9 = inlined_call_operand.hbm [shape: f32[2,8,32], index: 9, kind: output, shape index: {}]  }
   0x1   :  { %15 = vsyncpa [#allocation6], 0 }
   0x2   :  { %16 = vsyncpa [#allocation4], 0 }
   0x3   :  { %18 = vsyncpa [#allocation4 + $0x1], 0  ;;  %s961_s30 = smov 0   ;;  %s963_s10 = smov 0  }
   0x4   :  { %s965_s11 = smov 0   ;;  %s967_s12 = smov 0  }
   0x5 LB: > { %s982_s13 = sadd.s32 4294967295, %s903_s12   ;;  %s674_s14 = sadd.s32 4294967294, %s903_s12   ;;  %s903_s12 = sphi %s967_s12, %s1188_s12   ;;  %s899_s11 = sphi %s965_s11, %s1187_s11   ;;  %s895_s10 = sphi %s963_s10, %s1186_s10   ;;  %s891_s30 = sphi %s961_s30, %s1185_s30  }
   0x6   : > { %s986_s15 = sadd.s32 1, %s903_s12   ;;  %s230_s16 = sadd.s32 1, %s899_s11 }
   0x7   : > { %s227_s17 = ssub.s32 %s903_s12, %s986_s15  ;;  %p240_p0 = scmp.ne.s32.totalorder %s899_s11, %s895_s10 }
   0x8   : > { %p228_p1 = scmp.eq.s32.totalorder %s227_s17, 0  ;;  %p241_p2 = scmp.eq.s32.totalorder %s982_s13, 1 }
   0x9   : > { %p246_p3 = scmp.ne.s32.totalorder %s895_s10, %s891_s30  ;;  %p247_p4 = scmp.eq.s32.totalorder %s674_s14, 1 }
   0xa   : > { %s997_s18 = scalar_select %p228_p1, %s899_s11, %s230_s16  }
   0xb   : > { %p999_p5 = por %p241_p2, %p240_p0  ;;  %p1003_p6 = por %p247_p4, %p246_p3 }
   0xc   : > { %1172 = sst [smem:[#allocation11_spill]] %s997_s18  ;;  %p675_p7 = scmp.ge.s32.totalorder %s903_s12, 1 }
   0xd   : > { %s1173_s19 = scalar_select %p999_p5, 1, 0 }
   0xe   : > { %s1174_s20 = scalar_select %p1003_p6, 1, 0 }
   0xf   : > { %p254_p8 = scmp.lt.s32.totalorder %s903_s12, 3  ;;  %p1169_p9 = scmp.eq.s32.totalorder %s982_s13, 0 }
  0x10   : > { %s905_s22 = smov [#allocation2]   ;;  %s906_s24 = smov [#allocation5]  }
  0x11   : > { %p1010_p10 = pnand %p675_p7, %p254_p8  ;;  %s267_s23 = sshll.u32 %s905_s22, 4  ;;  %s268_s23 = int_to_ptr.vmem [resolvable:$true] %s267_s23 }
  0x12   : > { %s278_s25 = sshll.u32 %s906_s24, 4  ;;  %s777_s29 = scalar_lea.hbm %s1161_s2, 128  ;;  %s1022_s25 = int_to_ptr.vmem [resolvable:$true] %s278_s25 }
  0x13   : > { %s1175_s21 = scalar_select %p1010_p10, 1, 0 }
  0x14   : > { %p717_p11 = pneg %p1010_p10  ;;  %p778_p13 = scmp.ne.s32.totalorder %s1161_s2, %s777_s29 }
  0x15   : > { %p784_p3 = scmp.lt.u32.totalorder %s777_s29, %s1161_s2 }
  0x16   : > { %p1018_p12 = pnand %p1169_p9, %p717_p11 }
  0x18   : > { %p779_p0 = pneg %p1018_p12 }
  0x1a   : > { %p780_p1 = pnand %p779_p0, %p778_p13 }
  0x1c   : > { %p781_p2 = pneg %p780_p1 }
  0x1e   : > { %p786_p4 = pnand %p784_p3, %p781_p2 }
  0x20   : > { %789 = shalt.err (!%p786_p4)
}
  0x21   : > { %s790_s24 = scalar_lea.vmem %s268_s23, 128  ;;  %p798_p9 = scmp.lt.s32.totalorder %s268_s23, %s268_s23 }
  0x22   : > { %p791_p7 = scmp.ne.s32.totalorder %s268_s23, %s790_s24  ;;  %p799_p6 = scmp.lt.s32.totalorder %s790_s24, %s790_s24 }
  0x24   : > { %p793_p8 = pnand %p791_p7, %p779_p0  ;;  %p800_p5 = por %p799_p6, %p798_p9 }
  0x26   : > { %p794_p11 = pneg %p793_p8 }
  0x28   : > { %p801_p10 = pnand %p800_p5, %p794_p11 }
  0x2a   : > { %804 = shalt.err (!%p801_p10)
}
  0x2b   : > { %720 = dma.hbm_to_vmem [thread:$0]  (!%p1018_p12), %s1161_s2, 128, %s268_s23, [#allocation3]  }
  0x2c   : > { %s805_s16 = scalar_lea.hbm %s1162_s3, 128 }
  0x2d   : > { %p806_p13 = scmp.ne.s32.totalorder %s1162_s3, %s805_s16  ;;  %p812_p9 = scmp.lt.u32.totalorder %s805_s16, %s1162_s3 }
  0x2f   : > { %p808_p6 = pnand %p806_p13, %p779_p0 }
  0x31   : > { %p809_p5 = pneg %p808_p6 }
  0x33   : > { %p814_p10 = pnand %p812_p9, %p809_p5 }
  0x35   : > { %817 = shalt.err (!%p814_p10)
}
  0x36   : > { %s818_s23 = scalar_lea.vmem %s1022_s25, 128  ;;  %p826_p4 = scmp.lt.s32.totalorder %s1022_s25, %s1022_s25 }
  0x37   : > { %p819_p1 = scmp.ne.s32.totalorder %s1022_s25, %s818_s23  ;;  %p827_p7 = scmp.lt.s32.totalorder %s818_s23, %s818_s23 }
  0x39   : > { %p821_p2 = pnand %p819_p1, %p779_p0  ;;  %p828_p8 = por %p827_p7, %p826_p4 }
  0x3b   : > { %p822_p3 = pneg %p821_p2 }
  0x3d   : > { %p829_p11 = pnand %p828_p8, %p822_p3 }
  0x3f   : > { %832 = shalt.err (!%p829_p11)
}
  0x40   : > { %723 = dma.hbm_to_vmem [thread:$0]  (!%p1018_p12), %s1162_s3, 128, %s1022_s25, [#allocation6]  }
  0x41   : > { %p1177_p13 = scmp.ne.s32.totalorder %s1175_s21, 0 }
  0x42   : > { %p1178_p6 = scmp.eq.s32.totalorder (!%p1177_p13), %s982_s13, 0 }
  0x43   : > { %320 = sbr.rel (%p1177_p13) target bundleno = 792 (0x318), region = 56 }
  0x4a   : > { %878 = dma.done.wait (%p1178_p6), [#allocation3], 128   ;;  %p1179_p0 = pmov %p1178_p6 }
  0x4c   : > { %880 = vsyncadd (%p1179_p0), [#allocation3], 4294967168  ;;  %p1180_p5 = pmov %p1179_p0 }
  0x4d   : > { %p1181_p9 = pmov %p1179_p0 }
  0x4e   : > { %882 = dma.done.wait (%p1180_p5), [#allocation6], 128  }
  0x4f   : > { %884 = vsyncadd (%p1181_p9), [#allocation6], 4294967168  ;;  %p363_p10 = scmp.lt.s32.totalorder %s982_s13, 1  ;;  %v907_v0 = vmov 0   ;;  %v771_v2 = vld [vmem:[%s1164_s5] sm:$0xff]   ;;  %v908_v3 = vmov 0.0   ;;  %v397_v5 = vlaneseq }
  0x50   : > { %770 = vset.pattern.permute.xlu0 %v907_v0  ;;  %699 = vmatprep.subr.bf16.mxu0 %v908_v3  ;;  %vm909_vm0 = vmmov 0   ;;  %v772_v4 = vld [vmem:[%s1164_s5 + $0x8] sm:$0xff]   ;;  %v373_v8 = vld [vmem:[#allocation2] sm:$0xff]  ;;  %vm385_vm1 = vcmask 1041408   ;;  %vm411_vm2 = vcmask 1046528   ;;  %vm425_vm3 = vcmask 1045504  }
  0x51   : > { %s364_s25 = scalar_select %p363_p10, %s982_s13, 1  ;;  %703 = vmatprep.mubr.msk.bf16.mxu0 %vm909_vm0, %v908_v3  ;;  %700 = vmatpush3.bf16.msra.mxu0 %v771_v2  ;;  %v398_v6 = vshrl.u32 %v397_v5, 7  ;;  %v388_v13 = vld [vmem:[#allocation5] sm:$0x1f]  ;;  %v685_v24 = vld [vmem:[%s1163_s4] ss:$0 sm:$0xff] }
  0x52   : > { %701 = vmatprep.subr.bf16.mxu0 %v908_v3  ;;  %vm439_vm4 = vcmask 1044480   ;;  %vm453_vm5 = vcmask 1043456   ;;  %vm483_vm6 = vcmask 261120   ;;  %v686_v54 = vld [vmem:[%s1165_s6] ss:$0 sm:$0xff]  ;;  %s360_s28 = sand.u32 1, %s895_s10  }
  0x53   : > { %s683_s21 = sshll.u32 %s364_s25, 3  ;;  %v399_v10 = vsub.s32 0, %v398_v6  ;;  %v405_v11 = vsub.s32 1, %v398_v6  ;;  %v419_v12 = vsub.s32 2, %v398_v6  ;;  %v433_v14 = vsub.s32 3, %v398_v6  ;;  %s693_s24 = sshll.u32 %s982_s13, 7 }
  0x54   : > { %s370_s29 = scalar_lea.vmem %s1160_s1, %s683_s21  ;;  %s366_s18 = scalar_lea.vmem %s1159_s0, %s683_s21  ;;  %v447_v15 = vsub.s32 4, %v398_v6 }
  0x55   : > { %v375_v1 = vld [vmem:[%s370_s29] sm:$0xff]  ;;  %702 = vmatpush3.bf16.msra.mxu0 %v772_v4  ;;  %v400_v18 = vrot.slane %v388_v13, %v399_v10  ;;  %v406_v19 = vrot.slane %v388_v13, %v405_v11  ;;  %v420_v20 = vrot.slane %v388_v13, %v419_v12  ;;  %v434_v21 = vrot.slane %v388_v13, %v433_v14  ;;  %s682_s29 = sshll.u32 %s360_s28, 3  ;;  %s1116_s21 = scalar_lea.hbm %s1168_s9, %s693_s24 }
  0x56   : > { %378 = vperm.xlu0 %770, %v375_v1   ;;  %v372_v7 = vld [vmem:[%s366_s18] sm:$0xff]  ;;  %v448_v22 = vrot.slane %v388_v13, %v447_v15  ;;  %s362_s23 = scalar_lea.vmem [#allocation7], %s682_s29  ;;  %s568_s26 = scalar_lea.sflag [#allocation4], %s360_s28 }
  0x57   : > { %v374_v9 = vadd.f32 %v373_v8, %v372_v7  ;;  %v690_v12 = vld [vmem:[%s1166_s7] ss:$0 sm:$0xff]  ;;  %s581_s18 = sshll.u32 %s362_s23, 4  ;;  %p1182_p1 = scmp.ne.s32.totalorder %s1173_s19, 0  ;;  %s1118_s18 = int_to_ptr.vmem [resolvable:$true] %s581_s18 }
  0x58   : > { %v691_v14 = vld [vmem:[%s1167_s8] ss:$0 sm:$0xff]  ;;  %s833_s14 = scalar_lea.vmem %s1118_s18, 128  ;;  %s910_s13 = smov [#allocation7]  }
  0x59   : > { %p834_p12 = scmp.ne.s32.totalorder %s1118_s18, %s833_s14  ;;  %s837_s29 = sshll.u32 %s910_s13, 4  ;;  %s838_s29 = int_to_ptr.vmem [resolvable:$false] %s837_s29 }
  0x5a   : > { %s839_s16 = scalar_lea.vmem %s838_s29, 256  ;;  %p840_p4 = scmp.lt.s32.totalorder %s1118_s18, %s838_s29 }
  0x5b   : > { %p835_p2 = pnand %p834_p12, %p1182_p1  ;;  %p841_p7 = scmp.lt.s32.totalorder %s839_s16, %s833_s14 }
  0x5d   : > { %p836_p3 = pneg %p835_p2  ;;  %p842_p8 = por %p841_p7, %p840_p4 }
  0x5f   : > { %p843_p11 = pnand %p842_p8, %p836_p3 }
  0xd5   : > { %v379_v16 = vpop.permute.xlu0 %378 }
  0xd6   : > { %v381_v17 = vmul.f32 %v379_v16, %v374_v9 }
  0xd8   : > { %v383_v23 = vrot.slane %v381_v17, 6 }
  0xda   : > { %v386_v25 = vsel %vm385_vm1, 0.0, %v383_v23  ;;  %v387_v26 = vsel %vm385_vm1, %v383_v23, 0.0 }
  0xdb   : > { %v401_v27 = vmul.f32 %v400_v18, %v386_v25  ;;  %v407_v28 = vmul.f32 %v406_v19, %v386_v25  ;;  %v408_v29 = vmul.f32 %v406_v19, %v387_v26  ;;  %v421_v30 = vmul.f32 %v420_v20, %v386_v25 }
  0xdc   : > { %v422_v31 = vmul.f32 %v420_v20, %v387_v26  ;;  %v435_v32 = vmul.f32 %v434_v21, %v386_v25  ;;  %v436_v33 = vmul.f32 %v434_v21, %v387_v26  ;;  %v449_v34 = vmul.f32 %v448_v22, %v386_v25 }
  0xdd   : > { %v402_v35 = vadd.f32 %v685_v24, %v401_v27  ;;  %v412_v36 = vrot.slane %v407_v28, 1  ;;  %v413_v37 = vrot.slane %v408_v29, 1  ;;  %v426_v38 = vrot.slane %v421_v30, 2 }
  0xde   : > { %v427_v39 = vrot.slane %v422_v31, 2  ;;  %v450_v40 = vmul.f32 %v448_v22, %v387_v26  ;;  %v440_v42 = vrot.slane %v435_v32, 3  ;;  %v441_v43 = vrot.slane %v436_v33, 3 }
  0xdf   : > { %v414_v41 = vsel %vm411_vm2, %v412_v36, %v413_v37  ;;  %v454_v45 = vrot.slane %v449_v34, 4 }
  0xe0   : > { %v416_v44 = vadd.f32 %v414_v41, %v402_v35  ;;  %v455_v46 = vrot.slane %v450_v40, 4  ;;  %v428_v47 = vsel %vm425_vm3, %v426_v38, %v427_v39  ;;  %v442_v49 = vsel %vm439_vm4, %v440_v42, %v441_v43 }
  0xe2   : > { %v430_v48 = vadd.f32 %v428_v47, %v416_v44  ;;  %v456_v51 = vsel %vm453_vm5, %v454_v45, %v455_v46 }
  0xe4   : > { %v444_v50 = vadd.f32 %v442_v49, %v430_v48 }
  0xe6   : > { %v458_v52 = vadd.f32 %v456_v51, %v444_v50 }
  0xe8   : > { %v459_v53 = vpack.c.bf16 %v458_v52, %v458_v52 }
  0xea   : > { %704 = vmatmul.mubr.msk.bf16.vlgmr.msra.gmra.mrb[0].mxu0 %vm483_vm6, %v459_v53 }
 0x1bd   : > { %v521_v55 = vpop.f32.mrb[0].mxu0 }
 0x1be   : > { %v522_v56 = vadd.f32 %v686_v54, %v521_v55  ;;  %v705_v57 = vpop.f32.mrb[1].mxu0 }
 0x1bf   : > { %v524_v58 = vpop.f32.mrb[2].mxu0 }
 0x1c0   : > { %v706_v59 = vpop.f32.mrb[3].mxu0  ;;  %v527_v60 = vadd.f32 %v522_v56, %v381_v17 }
 0x1c2   : > { %v530_v61 = vsel %vm483_vm6, %v527_v60, 0.0 }
 0x1c3   : > { %531 = vadd.xlane.f32.xlu0 %v530_v61 }
 0x250   : > { %v532_v62 = vpop.xlane.xlu0 %531 }
 0x251   : > { %v534_v63 = vmul.f32 0.03125, %v532_v62 }
 0x253   : > { %v535_v0 = vsub.f32 %v527_v60, %v534_v63 }
 0x255   : > { %v536_v1 = vmul.f32 %v535_v0, %v535_v0 }
 0x257   : > { %v537_v2 = vsel %vm483_vm6, %v536_v1, 0.0 }
 0x258   : > { %538 = vadd.xlane.f32.xlu1 %v537_v2 }
 0x2e5   : > { %v539_v3 = vpop.xlane.xlu1 %538 }
 0x2e6   : > { %v541_v4 = vmul.f32 0.032258064, %v539_v3 }
 0x2e8   : > { %773 = vrsqrt.f32 %v541_v4  ;;  %vm544_vm7 = vcmp.eq.f32.partialorder %v541_v4, inf  ;;  %v547_v7 = vand.u32 2147483648, %v541_v4  ;;  %vm546_vm8 = vcmp.eq.f32.partialorder %v541_v4, 0.0 }
 0x2f2   : > { %v774_v5 = vpop.eup %773 }
 0x2f3   : > { %v543_v6 = vmul.f32 %v774_v5, %v541_v4 }
 0x2f5   : > { %v545_v8 = vsel %vm544_vm7, %v541_v4, %v543_v6 }
 0x2f6   : > { %v548_v9 = vsel %vm546_vm8, %v547_v7, %v545_v8 }
 0x2f7   : > { %v549_v10 = vadd.f32 0.001, %v548_v9 }
 0x2f9   : > { %775 = vrcp.f32 %v549_v10 }
 0x303   : > { %v776_v11 = vpop.eup %775 }
 0x304   : > { %v551_v13 = vmul.f32 %v776_v11, %v535_v0 }
 0x306   : > { %v558_v15 = vmul.f32 %v690_v12, %v551_v13 }
 0x308   : > { %v565_v16 = vadd.f32 %v691_v14, %v558_v15 }
 0x30a   : > { %566 = vst.msk [vmem:[%s362_s23] sm:$0xff] %vm483_vm6, %v565_v16 }
 0x30b   : > { %846 = shalt.err (!%p843_p11)
}
 0x30c   : > { %s847_s28 = scalar_lea.hbm %s1116_s21, 128  ;;  %s851_s24 = scalar_lea.hbm %s1168_s9, 256 }
 0x30d   : > { %p848_p13 = scmp.ne.s32.totalorder %s1116_s21, %s847_s28  ;;  %p852_p5 = scmp.lt.u32.totalorder %s1116_s21, %s1168_s9 }
 0x30e   : > { %p853_p9 = scmp.lt.u32.totalorder %s851_s24, %s847_s28  ;;  %p855_p12 = scmp.lt.u32.totalorder %s847_s28, %s1116_s21 }
 0x30f   : > { %p849_p6 = pnand %p848_p13, %p1182_p1 }
 0x310   : > { %p854_p10 = por %p853_p9, %p852_p5 }
 0x311   : > { %p850_p0 = pneg %p849_p6 }
 0x312   : > { %p856_p2 = por %p855_p12, %p854_p10 }
 0x314   : > { %p857_p3 = pnand %p856_p2, %p850_p0 }
 0x316   : > { %860 = shalt.err (!%p857_p3)
}
 0x317   : > { %715 = dma.vmem_to_hbm [thread:$0]  (%p1182_p1), %s1118_s18, 128, %s1116_s21, %s568_s26  }
 0x318 PF: > { %p732_p4 = scmp.ge.s32.totalorder %s903_s12, 2  ;;  %s593_s25 = sand.u32 1, %s891_s30  }
 0x319   : > { %p1183_p7 = scmp.ne.s32.totalorder %s1174_s20, 0  ;;  %s594_s14 = scalar_lea.sflag [#allocation4], %s593_s25 }
 0x31b   : > { %p725_p8 = pnand %p732_p4, %p1183_p7 }
 0x31d   : > { %886 = dma.done.wait (!%p725_p8), %s594_s14, 128  }
 0x31e   : > { %888 = vsyncadd (!%p725_p8), %s594_s14, 4294967168  ;;  %s1184_s13 = sld [smem:[#allocation11_spill]]  ;;  %p21_p11 = scmp.ge.s32.totalorder %s986_s15, 4  }
 0x31f   : > { %s1185_s30 = smov %s895_s10  ;;  %s1186_s10 = smov %s899_s11 }
 0x320   : > { %s1188_s12 = smov %s986_s15  ;;  %23 = sbr.rel (!%p21_p11) target bundleno = 5 (0x5), region = 103 }
 0x324   : > { %s1187_s11 = smov %s1184_s13 }
 0x327   :  { %599 = vsyncpa [#allocation3], 1 }
 0x328   :  { %601 = vsyncpa [#allocation3 + $0x1], 1 }
 0x329   :  { %602 = vsyncpa [#allocation6], 1 }
 0x32a   :  { %603 = vsyncpa [#allocation4], 1 }
 0x32b   :  { %605 = vsyncpa [#allocation4 + $0x1], 1 }

</bundles_post_ra>
